<compile_context>
chip_gen: v7x
topology: tpu7x:2x2x1
jax: 0.10.0
libtpu: 0.0.40
codegen_flags: <defaults>
</compile_context>

<pallas_src>
import functools
import math

import jax
import jax.numpy as jnp
from jax.experimental import pallas as pl
from jax.experimental.pallas import tpu as pltpu


def _norm_softmax_loss_kernel(emb_ref, w_ref, tgt_ref, loss_ref, *,
                              inv_temperature, n_total):
    step = pl.program_id(0)

    @pl.when(step == 0)
    def _init():
        loss_ref[...] = jnp.zeros_like(loss_ref)

    # ---- L2-normalize classifier rows (dim=1); fold in 1/temperature ----
    w = w_ref[...]                                               # (C, D)
    norm = jnp.sqrt(jnp.sum(w * w, axis=-1, keepdims=True))      # (C, 1)
    scale = inv_temperature / jnp.maximum(norm, 1e-12)           # F.normalize eps
    w_scaled = w * scale                                         # (C, D)

    # ---- logits for this row tile: (bm, D) @ (D, C) on the MXU ----
    emb = emb_ref[...]                                           # (bm, D)
    logits = jnp.dot(emb, w_scaled.T,
                     preferred_element_type=jnp.float32)         # (bm, C)

    # ---- stable per-row cross entropy: logsumexp(logits) - logits[target] ----
    m = jnp.max(logits, axis=-1, keepdims=True)
    lse = m + jnp.log(jnp.sum(jnp.exp(logits - m), axis=-1, keepdims=True))
    classes = jax.lax.broadcasted_iota(jnp.int32, logits.shape, 1)
    onehot = (classes == tgt_ref[...]).astype(jnp.float32)       # (bm, C)
    tgt_logit = jnp.sum(logits * onehot, axis=-1, keepdims=True)
    per_row = lse - tgt_logit                                    # (bm, 1)

    # accumulate the tile's loss-sum into the resident (1, 1) output block
    loss_ref[...] += jnp.sum(per_row, axis=0, keepdims=True)

    @pl.when(step == pl.num_programs(0) - 1)
    def _finalize():
        loss_ref[...] = loss_ref[...] * (1.0 / n_total)          # mean reduction


def norm_softmax_loss(embeddings, weight, instance_targets, *,
                      temperature=0.05, block_m=None):
    """Pallas forward of NormSoftmaxLoss. Returns a scalar f32 loss."""
    n, d = embeddings.shape
    c, d_w = weight.shape
    assert d == d_w, "embedding dim mismatch"
    if block_m is None:
        block_m = n if n <= 128 else 128
    assert n % block_m == 0, "batch must be divisible by the row tile"
    assert block_m == n or block_m % 8 == 0, "row tile must be sublane-aligned"

    targets2d = instance_targets.astype(jnp.int32).reshape(n, 1)

    kernel = functools.partial(_norm_softmax_loss_kernel,
                               inv_temperature=1.0 / temperature,
                               n_total=float(n))

    out = pl.pallas_call(
        kernel,
        out_shape=jax.ShapeDtypeStruct((1, 1), jnp.float32),
        grid_spec=pltpu.PrefetchScalarGridSpec(
            num_scalar_prefetch=0,
            grid=(n // block_m,),
            in_specs=[
                pl.BlockSpec((block_m, d), lambda i: (i, 0)),   # embeddings tile
                pl.BlockSpec((c, d), lambda i: (0, 0)),         # full weight each step
                pl.BlockSpec((block_m, 1), lambda i: (i, 0)),   # targets tile
            ],
            out_specs=pl.BlockSpec((1, 1), lambda i: (0, 0)),   # resident accumulator
        ),
        compiler_params=pltpu.CompilerParams(
            # loss accumulates across row tiles -> reduction axis
            dimension_semantics=("arbitrary",)),
    )(embeddings.astype(jnp.float32), weight.astype(jnp.float32), targets2d)
    return out[0, 0]


def reference_loss(embeddings, weight, instance_targets, temperature=0.05):
    """Pure-JAX reference matching the PyTorch module (training forward)."""
    norm = jnp.sqrt(jnp.sum(weight * weight, axis=1, keepdims=True))
    nw = weight / jnp.maximum(norm, 1e-12)
    logits = embeddings @ nw.T / temperature
    logp = jax.nn.log_softmax(logits, axis=-1)
    n = embeddings.shape[0]
    return -jnp.mean(logp[jnp.arange(n), instance_targets])


if __name__ == "__main__":
    key = jax.random.PRNGKey(0)
    k_e, k_w, k_t = jax.random.split(key, 3)

    N, D, C = 16, 32, 2          # batch, embedding dim, num_instances (per module)
    TEMP = 0.05

    embeddings = jax.random.normal(k_e, (N, D), dtype=jnp.float32)
    stdv = 1.0 / math.sqrt(D)    # matches self.weight.data.uniform_(-stdv, stdv)
    weight = jax.random.uniform(k_w, (C, D), jnp.float32, -stdv, stdv)
    instance_targets = jax.random.randint(k_t, (N,), 0, C, dtype=jnp.int32)

    # block_m=8 -> 2 grid steps, exercising the cross-step loss accumulator.
    loss = norm_softmax_loss(embeddings, weight, instance_targets,
                             temperature=TEMP, block_m=8)
    loss = jax.block_until_ready(loss)

    ref = reference_loss(embeddings, weight, instance_targets, TEMP)
    assert loss.shape == ()
    assert jnp.allclose(loss, ref, atol=1e-4, rtol=1e-4), (float(loss), float(ref))

    print("KERNEL_OK")
</pallas_src>

<mosaic_0001>
module attributes {stable_mosaic.version = 11 : i64} {
  func.func @_norm_softmax_loss_kernel(%arg0: i32, %arg1: memref<8x32xf32, #tpu.memory_space<vmem>>, %arg2: memref<2x32xf32, #tpu.memory_space<vmem>>, %arg3: memref<8x1xi32, #tpu.memory_space<vmem>>, %arg4: memref<1x1xf32, #tpu.memory_space<vmem>>) attributes {dimension_semantics = [#tpu.dimension_semantics<arbitrary>], iteration_bounds = array<i64: 2>, scalar_prefetch = 0 : i64, scratch_operands = 0 : i64, tpu.core_type = #tpu.core_type<tc>, window_params = [{transform_indices = @transform_0, window_bounds = array<i64: 8, 32>}, {pipeline_mode = #tpu.pipeline_mode<synchronous>, transform_indices = @transform_1, window_bounds = array<i64: 2, 32>}, {transform_indices = @transform_2, window_bounds = array<i64: 8, 1>}, {pipeline_mode = #tpu.pipeline_mode<synchronous>, transform_indices = @transform_3, window_bounds = array<i64: 1, 1>}]} {
    %c0_i32 = arith.constant 0 : i32
    %0 = arith.cmpi eq, %arg0, %c0_i32 : i32
    %1 = arith.extui %0 : i1 to i32
    %c0_i32_0 = arith.constant 0 : i32
    %2 = arith.cmpi ne, %1, %c0_i32_0 : i32
    scf.if %2 {
      %cst_18 = arith.constant 0.000000e+00 : f32
      %44 = vector.broadcast %cst_18 : f32 to vector<1x1xf32>
      %c0_19 = arith.constant 0 : index
      %c0_20 = arith.constant 0 : index
      %45 = vector.load %arg4[%c0_19, %c0_20] : memref<1x1xf32, #tpu.memory_space<vmem>>, vector<1x1xf32>
      tpu.vector_store %arg4[%c0_19, %c0_20], %44 {strides = array<i32>} : memref<1x1xf32, #tpu.memory_space<vmem>>, vector<1x1xf32>,
    } else {
    }
    %c0 = arith.constant 0 : index
    %c0_1 = arith.constant 0 : index
    %3 = vector.load %arg2[%c0, %c0_1] : memref<2x32xf32, #tpu.memory_space<vmem>>, vector<2x32xf32>
    %4 = arith.mulf %3, %3 : vector<2x32xf32>
    %cst = arith.constant dense<0.000000e+00> : vector<2xf32>
    %5 = vector.multi_reduction <add>, %4, %cst [1] : vector<2x32xf32> to vector<2xf32>
    %6 = vector.shape_cast %5 : vector<2xf32> to vector<2x1xf32>
    %7 = math.sqrt %6 : vector<2x1xf32>
    %cst_2 = arith.constant 9.99999996E-13 : f32
    %8 = vector.broadcast %cst_2 : f32 to vector<2x1xf32>
    %9 = arith.maximumf %7, %8 : vector<2x1xf32>
    %cst_3 = arith.constant 2.000000e+01 : f32
    %10 = vector.broadcast %cst_3 : f32 to vector<2x1xf32>
    %11 = arith.divf %10, %9 : vector<2x1xf32>
    %12 = vector.broadcast %11 : vector<2x1xf32> to vector<2x32xf32>
    %13 = arith.mulf %3, %12 : vector<2x32xf32>
    %c0_4 = arith.constant 0 : index
    %c0_5 = arith.constant 0 : index
    %14 = vector.load %arg1[%c0_4, %c0_5] : memref<8x32xf32, #tpu.memory_space<vmem>>, vector<8x32xf32>
    %15 = tpu.transpose %13, [1, 0] : vector<2x32xf32> -> vector<32x2xf32>
    %cst_6 = arith.constant dense<0.000000e+00> : vector<8x2xf32>
    %16 = tpu.matmul %14, %15, %cst_6 {dimension_numbers = #tpu.dot_dimension_numbers<[1], [0], [0], [1], [0, 0, 1, 1], [], []>} : vector<8x32xf32>, vector<32x2xf32>, vector<8x2xf32> -> vector<8x2xf32>
    %cst_7 = arith.constant dense<0xFF800000> : vector<8xf32>
    %17 = vector.multi_reduction <maximumf>, %16, %cst_7 [1] : vector<8x2xf32> to vector<8xf32>
    %18 = vector.shape_cast %17 : vector<8xf32> to vector<8x1xf32>
    %19 = vector.broadcast %18 : vector<8x1xf32> to vector<8x2xf32>
    %20 = arith.subf %16, %19 : vector<8x2xf32>
    %21 = math.exp %20 : vector<8x2xf32>
    %cst_8 = arith.constant dense<0.000000e+00> : vector<8xf32>
    %22 = vector.multi_reduction <add>, %21, %cst_8 [1] : vector<8x2xf32> to vector<8xf32>
    %23 = vector.shape_cast %22 : vector<8xf32> to vector<8x1xf32>
    %24 = math.log %23 : vector<8x1xf32>
    %25 = arith.addf %18, %24 : vector<8x1xf32>
    %26 = tpu.iota {dimensions = array<i32: 1>} : vector<8x2xi32>
    %c0_9 = arith.constant 0 : index
    %c0_10 = arith.constant 0 : index
    %27 = vector.load %arg3[%c0_9, %c0_10] : memref<8x1xi32, #tpu.memory_space<vmem>>, vector<8x1xi32>
    %28 = vector.broadcast %27 : vector<8x1xi32> to vector<8x2xi32>
    %29 = arith.cmpi eq, %26, %28 : vector<8x2xi32>
    %30 = arith.extui %29 : vector<8x2xi1> to vector<8x2xi32>
    %31 = arith.sitofp %30 : vector<8x2xi32> to vector<8x2xf32>
    %32 = arith.mulf %16, %31 : vector<8x2xf32>
    %cst_11 = arith.constant dense<0.000000e+00> : vector<8xf32>
    %33 = vector.multi_reduction <add>, %32, %cst_11 [1] : vector<8x2xf32> to vector<8xf32>
    %34 = vector.shape_cast %33 : vector<8xf32> to vector<8x1xf32>
    %35 = arith.subf %25, %34 : vector<8x1xf32>
    %c0_12 = arith.constant 0 : index
    %c0_13 = arith.constant 0 : index
    %36 = vector.load %arg4[%c0_12, %c0_13] : memref<1x1xf32, #tpu.memory_space<vmem>>, vector<1x1xf32>
    %cst_14 = arith.constant dense<0.000000e+00> : vector<1xf32>
    %37 = vector.multi_reduction <add>, %35, %cst_14 [0] : vector<8x1xf32> to vector<1xf32>
    %38 = vector.shape_cast %37 : vector<1xf32> to vector<1x1xf32>
    %39 = arith.addf %36, %38 : vector<1x1xf32>
    %c0_15 = arith.constant 0 : index
    %c0_16 = arith.constant 0 : index
    %40 = vector.load %arg4[%c0_15, %c0_16] : memref<1x1xf32, #tpu.memory_space<vmem>>, vector<1x1xf32>
    tpu.vector_store %arg4[%c0_15, %c0_16], %39 {strides = array<i32>} : memref<1x1xf32, #tpu.memory_space<vmem>>, vector<1x1xf32>,
    %c1_i32 = arith.constant 1 : i32
    %41 = arith.cmpi eq, %arg0, %c1_i32 : i32
    %42 = arith.extui %41 : i1 to i32
    %c0_i32_17 = arith.constant 0 : i32
    %43 = arith.cmpi ne, %42, %c0_i32_17 : i32
    scf.if %43 {
      %c0_18 = arith.constant 0 : index
      %c0_19 = arith.constant 0 : index
      %44 = vector.load %arg4[%c0_18, %c0_19] : memref<1x1xf32, #tpu.memory_space<vmem>>, vector<1x1xf32>
      %cst_20 = arith.constant 6.250000e-02 : f32
      %45 = vector.broadcast %cst_20 : f32 to vector<1x1xf32>
      %46 = arith.mulf %44, %45 : vector<1x1xf32>
      %c0_21 = arith.constant 0 : index
      %c0_22 = arith.constant 0 : index
      %47 = vector.load %arg4[%c0_21, %c0_22] : memref<1x1xf32, #tpu.memory_space<vmem>>, vector<1x1xf32>
      tpu.vector_store %arg4[%c0_21, %c0_22], %46 {strides = array<i32>} : memref<1x1xf32, #tpu.memory_space<vmem>>, vector<1x1xf32>,
    } else {
    }
    return
  }
  func.func @transform_0(%arg0: i32) -> (i32, i32) {
    %c0_i32 = arith.constant 0 : i32
    %c0_i32_0 = arith.constant 0 : i32
    return %arg0, %c0_i32 : i32, i32
  }
  func.func @transform_1(%arg0: i32) -> (i32, i32) {
    %c0_i32 = arith.constant 0 : i32
    %c0_i32_0 = arith.constant 0 : i32
    %c0_i32_1 = arith.constant 0 : i32
    return %c0_i32, %c0_i32_0 : i32, i32
  }
  func.func @transform_2(%arg0: i32) -> (i32, i32) {
    %c0_i32 = arith.constant 0 : i32
    %c0_i32_0 = arith.constant 0 : i32
    return %arg0, %c0_i32 : i32, i32
  }
  func.func @transform_3(%arg0: i32) -> (i32, i32) {
    %c0_i32 = arith.constant 0 : i32
    %c0_i32_0 = arith.constant 0 : i32
    %c0_i32_1 = arith.constant 0 : i32
    return %c0_i32, %c0_i32_0 : i32, i32
  }
}

</mosaic_0001>

<bundles_post_ra>
// kernel: tpu_custom_call.1
= control target key start
LH: loop header
LB: loop body
LE: loop exit
PB: predicated region body
PF: predicated region fallthrough
CT: control target
= control target key end

     0   :  { %8 = vsyncpa [#allocation3], 0  ;;  %s488_s12 = smov 0   ;;  %s540_s0 = inlined_call_operand.vmem [shape: f32[16,32], index: 0, kind: input, shape index: {}]   ;;  %s541_s1 = inlined_call_operand.vmem [shape: f32[2,32], index: 1, kind: input, shape index: {}]   ;;  %s542_s2 = inlined_call_operand.vmem [shape: s32[16,1], index: 2, kind: input, shape index: {}]   ;;  %s543_s3 = inlined_call_operand.hbm [shape: f32[1,1], index: 3, kind: output, shape index: {}]  }
   0x1 LB: > { %s494_s13 = sadd.s32 4294967295, %s461_s12   ;;  %p377_p0 = scmp.ge.s32.totalorder %s461_s12, 1  ;;  %s461_s12 = sphi %s488_s12, %s14_s12  }
   0x2   : > { %p141_p1 = scmp.lt.s32.totalorder %s461_s12, 3 }
   0x4   : > { %p142_p2 = pnand %p377_p0, %p141_p1 }
   0x5   : > { %p163_p3 = scmp.lt.s32.totalorder (!%p142_p2), %s494_s13, 1  ;;  %p380_p4 = scmp.ne.s32.totalorder (!%p142_p2), %s494_s13, 0 }
   0x6   : > { %145 = sbr.rel (%p142_p2) target bundleno = 782 (0x30e), region = 32 }
   0xd   : > { %s164_s14 = scalar_select %p163_p3, %s494_s13, 1 }
   0xe   : > { %174 = sbr.rel (%p380_p4) target bundleno = 21 (0x15), region = 36  ;;  %vm175_vm0 = vcmask (!%p380_p4), 0   ;;  %v463_v0 = vmov (!%p380_p4), 0.0  }
   0xf   : > { %s378_s15 = sshll.u32 %s164_s14, 3  ;;  %176 = vst.msk [vmem:[#allocation2] sm:$0x1] (!%p380_p4), %vm175_vm0, %v463_v0 }
  0x10   : > { %s503_s18 = scalar_lea.vmem %s540_s0, %s378_s15  ;;  %s170_s21 = scalar_lea.vmem %s542_s2, %s378_s15 }
  0x15 PF: > { %v177_v1 = vld [vmem:[%s541_s1] sm:$0x3]  ;;  %vm179_vm1 = vcmask 254976   ;;  %v464_v4 = vmov 0.0   ;;  %vm465_vm2 = vmmov 0   ;;  %v466_v6 = vmov 0  }
  0x16   : > { %v178_v2 = vmul.f32 %v177_v1, %v177_v1  ;;  %391 = vmatprep.subr.mxu0 %v464_v4  ;;  %393 = vmatprep.mubr.msk.f32.mxu0 %vm465_vm2, %v464_v4  ;;  %v287_v5 = vld [vmem:[%s170_s21] sm:$0xff]  ;;  %vm195_vm5 = vcmask 261120   ;;  %v285_v18 = vlaneseq  ;;  %vm272_vm7 = vcmask 15360   ;;  %p384_p5 = scmp.ne.s32.totalorder %s494_s13, 1 }
  0x17   : > { %415 = vset.pattern.permute.xlu1 %v466_v6  ;;  %416 = vset.pattern.permute.xlu0 %v466_v6  ;;  %v194_v17 = vld [vmem:[%s503_s18] sm:$0xff]  ;;  %vm307_vm8 = vcmask 0  }
  0x18   : > { %v180_v3 = vsel %vm179_vm1, %v178_v2, 0.0  ;;  %289 = vperm.xlu1 %415, %v287_v5   ;;  %v286_v19 = vand.u32 127, %v285_v18  ;;  %v299_v43 = vld [vmem:[#allocation2] sm:$0x1] }
  0x19   : > { %181 = vadd.xlane.f32.xlu0 %v180_v3 }
  0x97   : > { %v290_v20 = vpop.permute.xlu1 %289 }
  0x98   : > { %vm291_vm6 = vcmp.eq.s32.totalorder %v286_v19, %v290_v20 }
  0x99   : > { %v383_v21 = vsel %vm291_vm6, 1.0, %v464_v4 }
  0xa6   : > { %v182_v7 = vpop.xlane.xlu0 %181 }
  0xa7   : > { %417 = vrsqrt.f32 %v182_v7  ;;  %vm185_vm3 = vcmp.eq.f32.partialorder %v182_v7, inf  ;;  %v188_v10 = vand.u32 2147483648, %v182_v7  ;;  %vm187_vm4 = vcmp.eq.f32.partialorder %v182_v7, 0.0 }
  0xb1   : > { %v418_v8 = vpop.eup %417 }
  0xb2   : > { %v184_v9 = vmul.f32 %v418_v8, %v182_v7 }
  0xb4   : > { %v186_v11 = vsel %vm185_vm3, %v182_v7, %v184_v9 }
  0xb5   : > { %v189_v12 = vsel %vm187_vm4, %v188_v10, %v186_v11 }
  0xb6   : > { %v190_v13 = vmax.f32 %v189_v12, 1e-12 }
  0xb8   : > { %419 = vrcp.f32 %v190_v13 }
  0xc2   : > { %v420_v14 = vpop.eup %419 }
  0xc3   : > { %v192_v15 = vmul.f32 20.0, %v420_v14 }
  0xc5   : > { %v193_v16 = vmul.f32 %v192_v15, %v177_v1 }
  0xc7   : > { %392 = vmatpush3.xpose.msk.msra.mxu0 %vm195_vm5, %v193_v16 }
  0xca   : > { %394 = vmatmul.mubr.msk.f32.vlgmr.msra.gmra.mrb[0].mxu0 %vm195_vm5, %v194_v17 }
 0x19d   : > { %v268_v22 = vpop.f32.mrb[0].mxu0 }
 0x19e   : > { %v395_v23 = vpop.f32.mrb[1].mxu0  ;;  %v273_v24 = vsel %vm272_vm7, %v268_v22, -inf  ;;  %v294_v25 = vmul.f32 %v383_v21, %v268_v22 }
 0x19f   : > { %274 = vmax.xlane.f32.xlu0 %v273_v24 }
 0x1a0   : > { %v295_v26 = vsel %vm272_vm7, %v294_v25, 0.0 }
 0x1a3   : > { %296 = vadd.xlane.f32.xlu0 %v295_v26 }
 0x22c   : > { %v275_v27 = vpop.xlane.xlu0 %274 }
 0x22d   : > { %v276_v28 = vsub.f32 %v268_v22, %v275_v27 }
 0x22f   : > { %v277_v29 = vmul.f32 1.442695, %v276_v28 }
 0x230   : > { %v297_v36 = vpop.xlane.xlu0 %296 }
 0x231   : > { %421 = vpow2.f32 %v277_v29 }
 0x23b   : > { %v422_v30 = vpop.eup %421 }
 0x23c   : > { %v279_v31 = vsel %vm272_vm7, %v422_v30, 0.0 }
 0x23d   : > { %280 = vadd.xlane.f32.xlu1 %v279_v31 }
 0x2ca   : > { %v281_v32 = vpop.xlane.xlu1 %280 }
 0x2cb   : > { %423 = vlog2.f32 %v281_v32 }
 0x2d5   : > { %v424_v33 = vpop.eup %423 }
 0x2d6   : > { %v283_v34 = vmul.f32 0.6931472, %v424_v33 }
 0x2d8   : > { %v284_v35 = vadd.f32 %v283_v34, %v275_v27 }
 0x2da   : > { %v298_v37 = vsub.f32 %v284_v35, %v297_v36 }
 0x2dc   : > { %v300_v38 = vrot.slane %v298_v37, 4 }
 0x2de   : > { %v301_v39 = vadd.f32 %v300_v38, %v298_v37 }
 0x2e0   : > { %v302_v40 = vrot.slane %v301_v39, 2 }
 0x2e2   : > { %v303_v41 = vadd.f32 %v302_v40, %v301_v39 }
 0x2e4   : > { %v304_v42 = vrot.slane %v303_v41, 1  ;;  %312 = sbr.rel (%p384_p5) target bundleno = 757 (0x2f5), region = 40 }
 0x2e6   : > { %v305_v44 = vadd.f32 %v304_v42, %v303_v41 }
 0x2e8   : > { %v306_v45 = vadd.f32 %v305_v44, %v299_v43 }
 0x2ea   : > { %308 = vst.msk [vmem:[#allocation2] sm:$0x1] %vm307_vm8, %v306_v45 }
 0x2f1   : > { %v313_v46 = vld [vmem:[#allocation2] sm:$0x1] }
 0x2f2   : > { %v314_v47 = vmul.f32 0.0625, %v313_v46 }
 0x2f4   : > { %315 = vst.msk [vmem:[#allocation2] sm:$0x1] %vm307_vm8, %v314_v47 }
 0x2f5 PF: > { %p400_p6 = scmp.eq.s32.totalorder %s494_s13, 1  ;;  %s467_s24 = smov [#allocation2]  }
 0x2f6   : > { %s323_s25 = sshll.u32 %s467_s24, 4  ;;  %s324_s25 = int_to_ptr.vmem [resolvable:$true] %s323_s25 }
 0x2f7   : > { %s425_s26 = scalar_lea.vmem %s324_s25, 16  ;;  %s431_s27 = scalar_lea.vmem %s324_s25, 32 }
 0x2f8   : > { %p426_p7 = scmp.ne.s32.totalorder %s324_s25, %s425_s26  ;;  %p432_p10 = scmp.lt.s32.totalorder %s324_s25, %s324_s25 }
 0x2f9   : > { %p433_p11 = scmp.lt.s32.totalorder %s431_s27, %s425_s26 }
 0x2fa   : > { %p427_p8 = pnand %p426_p7, %p400_p6 }
 0x2fb   : > { %p434_p12 = por %p433_p11, %p432_p10 }
 0x2fc   : > { %p428_p9 = pneg %p427_p8 }
 0x2fe   : > { %p435_p13 = pnand %p434_p12, %p428_p9 }
 0x300   : > { %438 = shalt.err (!%p435_p13)
}
 0x301   : > { %s439_s30 = scalar_lea.hbm %s543_s3, 16 }
 0x302   : > { %p440_p0 = scmp.ne.s32.totalorder %s543_s3, %s439_s30  ;;  %p445_p3 = scmp.lt.u32.totalorder %s439_s30, %s543_s3 }
 0x304   : > { %p441_p1 = pnand %p440_p0, %p400_p6 }
 0x306   : > { %p442_p2 = pneg %p441_p1 }
 0x308   : > { %p447_p4 = pnand %p445_p3, %p442_p2 }
 0x30a   : > { %450 = shalt.err (!%p447_p4)
}
 0x30b   : > { %397 = dma.vmem_to_hbm [thread:$0]  (%p400_p6), %s324_s25, 16, %s543_s3, [#allocation3]  }
 0x30c   : > { %456 = dma.done.wait (%p400_p6), [#allocation3], 16  }
 0x30d   : > { %458 = vsyncadd (%p400_p6), [#allocation3], 4294967280 }
 0x30e PF: > { %s14_s12 = sadd.s32 1, %s461_s12  }
 0x30f   : > { %p11_p5 = scmp.ge.s32.totalorder %s14_s12, 4  }
 0x311   :  { %13 = sbr.rel (!%p11_p5) target bundleno = 1 (0x1), region = 70 }
 0x318   :  { %336 = vsyncpa [#allocation3], 1 }
 0x319   :  { %338 = vsyncpa [#allocation3 + $0x1], 1 }

</bundles_post_ra>
